<compile_context>
chip_gen: v7x
topology: tpu7x:2x2x1
jax: 0.10.0
libtpu: 0.0.40
codegen_flags: <defaults>
</compile_context>

<pallas_src>
import functools

import jax
import jax.numpy as jnp
from jax import lax
from jax.experimental import pallas as pl
from jax.experimental.pallas import tpu as pltpu

LANE = 128
# Conservative cap for keeping the embedding table VMEM-resident (leaves room
# for MLP weights, pipeline buffers and scratch under the scoped VMEM default
# on v5e/v6e/v7x).
_VMEM_TABLE_BUDGET_BYTES = 8 * 1024 * 1024


def _round_up(x, m):
    return (x + m - 1) // m * m


def _fwd_kernel(TM, S,
                tokens_ref,                       # SMEM (B_pad*S,) int32 (prefetch)
                emb_ref,                          # VMEM (V, E) f32 (resident table)
                w1_ref, b1_ref, w2_ref, b2_ref,   # VMEM-resident MLP params (f32)
                w3_ref, b3_ref,
                out_ref,                          # VMEM (TM, N_pad) f32
                sent_ref):                        # VMEM scratch (TM, E) f32
    base = pl.program_id(0) * TM

    # 1) sent_emd[r] = sum_s embedding(tokens[base + r, s])
    #    Gather from the VMEM-resident table with dynamic row loads; the S rows
    #    of each batch row are accumulated on arrival (no staging buffer, no
    #    cross-sublane reduction).
    def gather_row(r, carry):
        off = (base + r) * S
        acc = emb_ref[pl.ds(tokens_ref[off], 1), :]                 # (1, E)
        for s in range(1, S):                                       # S is static & small
            acc = acc + emb_ref[pl.ds(tokens_ref[off + s], 1), :]
        sent_ref[pl.ds(r, 1), :] = acc
        return carry

    lax.fori_loop(0, TM, gather_row, 0)

    # 2) MLP in f32 (f32 MXU accumulation).  Dropout(p=0.5, training=False)
    #    is the identity, matching the module's eval-time forward.
    sent = sent_ref[...]                                            # (TM, E) f32
    h1 = jnp.dot(sent, w1_ref[...],
                 preferred_element_type=jnp.float32) + b1_ref[...]
    h1 = jnp.maximum(h1, 0.0)
    h2 = jnp.dot(h1, w2_ref[...],
                 preferred_element_type=jnp.float32) + b2_ref[...]
    h2 = jnp.maximum(h2, 0.0)
    out_ref[...] = jnp.dot(h2, w3_ref[...],
                           preferred_element_type=jnp.float32) + b3_ref[...]


def embedding_e2e_forward(tokens, emb_table, w1, b1, w2, b2, w3, b3,
                          *, tile_m=None):
    """tokens: (B, S) int32. Returns (B, 2) float32 logits."""
    B, S = tokens.shape
    V, E = emb_table.shape
    H1 = w1.shape[1]          # 256
    H2 = w2.shape[1]          # 128
    N = w3.shape[1]           # 2
    N_pad = _round_up(N, LANE)    # lane-dense logits (pad 2 -> 128)

    if V * E * 4 > _VMEM_TABLE_BUDGET_BYTES:
        # TODO(synk): add an HBM-resident, double-buffered row-DMA gather path
        # (bounded in-flight copies, accumulate-on-arrival) for vocab tables
        # exceeding the VMEM budget (<=64 MiB total on v7x, 128 MiB on v5e/v6e).
        raise NotImplementedError("embedding table too large for VMEM-resident path")

    if tile_m is None:
        # 256 amortizes per-grid-step overhead and fills the v6e/v7x MXU;
        # callers with small B just get one tile of round_up(B, 8) rows.
        tile_m = min(256, _round_up(B, 8))
    TM = tile_m
    B_pad = _round_up(B, TM)

    f32 = jnp.float32
    # Flat 1-D token ids for SMEM (2-D SMEM would pad last dim to 128).
    # Padded rows use token id 0 (always in-bounds); their outputs are sliced off.
    tokens_flat = jnp.zeros((B_pad * S,), jnp.int32).at[:B * S].set(
        tokens.reshape(-1).astype(jnp.int32))

    emb_p = emb_table.astype(f32)                      # native (V, E), no per-call pad
    w1_p = w1.astype(f32)
    w2_p = w2.astype(f32)
    b1_p = b1.reshape(1, H1).astype(f32)
    b2_p = b2.reshape(1, H2).astype(f32)
    # Only the tiny fc3 params get lane-padded (keeps the output store lane-dense).
    w3_p = jnp.zeros((H2, N_pad), f32).at[:, :N].set(w3.astype(f32))
    b3_p = jnp.zeros((1, N_pad), f32).at[:, :N].set(b3.reshape(1, N).astype(f32))

    grid = (B_pad // TM,)
    kernel = functools.partial(_fwd_kernel, TM, S)

    out = pl.pallas_call(
        kernel,
        out_shape=jax.ShapeDtypeStruct((B_pad, N_pad), f32),
        grid_spec=pltpu.PrefetchScalarGridSpec(
            num_scalar_prefetch=1,                               # token ids -> SMEM
            grid=grid,
            in_specs=[
                pl.BlockSpec((V, E), lambda i, tok: (0, 0)),     # table, VMEM-resident
                pl.BlockSpec((E, H1), lambda i, tok: (0, 0)),    # W1 (resident)
                pl.BlockSpec((1, H1), lambda i, tok: (0, 0)),    # b1
                pl.BlockSpec((H1, H2), lambda i, tok: (0, 0)),   # W2
                pl.BlockSpec((1, H2), lambda i, tok: (0, 0)),    # b2
                pl.BlockSpec((H2, N_pad), lambda i, tok: (0, 0)),# W3 (lane-padded)
                pl.BlockSpec((1, N_pad), lambda i, tok: (0, 0)), # b3 (lane-padded)
            ],
            out_specs=pl.BlockSpec((TM, N_pad), lambda i, tok: (i, 0)),
            scratch_shapes=[
                pltpu.VMEM((TM, E), f32),          # per-tile summed sentence embeddings
            ],
        ),
        compiler_params=pltpu.CompilerParams(
            dimension_semantics=("parallel",),      # batch tiles -> both TCs on v7x
        ),
    )(tokens_flat, emb_p, w1_p, b1_p, w2_p, b2_p, w3_p, b3_p)

    return out[:B, :N]


def init_params(key, vocab_size, embedding_dim):
    k = jax.random.split(key, 7)
    init_range = 1.0 / embedding_dim
    emb = jax.random.uniform(k[0], (vocab_size, embedding_dim),
                             minval=-init_range, maxval=init_range,
                             dtype=jnp.float32)
    emb = emb.at[0, :].set(0.0)  # padding_idx=0 -> zero row

    def linear(kw, kb, fan_in, fan_out):
        bound = 1.0 / jnp.sqrt(fan_in)
        w = jax.random.uniform(kw, (fan_in, fan_out),
                               minval=-bound, maxval=bound, dtype=jnp.float32)
        b = jax.random.uniform(kb, (1, fan_out),
                               minval=-bound, maxval=bound, dtype=jnp.float32)
        return w, b

    w1, b1 = linear(k[1], k[2], embedding_dim, 256)
    w2, b2 = linear(k[3], k[4], 256, 128)
    w3, b3 = linear(k[5], k[6], 128, 2)
    return emb, w1, b1, w2, b2, w3, b3


def reference_forward(tokens, emb_table, w1, b1, w2, b2, w3, b3):
    # Pure-f32 reference (kernel also runs f32 end-to-end).
    sent = jnp.sum(emb_table[tokens], axis=1)
    h1 = jnp.maximum(sent @ w1 + b1, 0.0)
    h2 = jnp.maximum(h1 @ w2 + b2, 0.0)
    return h2 @ w3 + b3


if __name__ == "__main__":
    VOCAB, EMB_DIM = 64, 32
    B, S = 4, 8

    key = jax.random.PRNGKey(0)
    k_tok, k_param = jax.random.split(key)
    tokens = jax.random.randint(k_tok, (B, S), minval=0, maxval=VOCAB,
                                dtype=jnp.int32)
    params = init_params(k_param, VOCAB, EMB_DIM)

    out = embedding_e2e_forward(tokens, *params)
    out = jax.block_until_ready(out)

    ref = reference_forward(tokens, *params)
    assert out.shape == (B, 2)
    assert jnp.allclose(out, ref, atol=5e-3, rtol=5e-3), (out, ref)

    print("KERNEL_OK")
</pallas_src>

<mosaic_0001>
module attributes {stable_mosaic.version = 11 : i64} {
  func.func @_fwd_kernel(%arg0: i32, %arg1: memref<64xi32, #tpu.memory_space<smem>>, %arg2: memref<64x32xf32, #tpu.memory_space<vmem>>, %arg3: memref<32x256xf32, #tpu.memory_space<vmem>>, %arg4: memref<1x256xf32, #tpu.memory_space<vmem>>, %arg5: memref<256x128xf32, #tpu.memory_space<vmem>>, %arg6: memref<1x128xf32, #tpu.memory_space<vmem>>, %arg7: memref<128x128xf32, #tpu.memory_space<vmem>>, %arg8: memref<1x128xf32, #tpu.memory_space<vmem>>, %arg9: memref<8x128xf32, #tpu.memory_space<vmem>>, %arg10: memref<8x32xf32, #tpu.memory_space<vmem>>) attributes {dimension_semantics = [#tpu.dimension_semantics<parallel>], iteration_bounds = array<i64: 1>, scalar_prefetch = 1 : i64, scratch_operands = 1 : i64, tpu.core_type = #tpu.core_type<tc>, window_params = [{pipeline_mode = #tpu.pipeline_mode<synchronous>, transform_indices = @transform_0, window_bounds = array<i64: 64, 32>}, {pipeline_mode = #tpu.pipeline_mode<synchronous>, transform_indices = @transform_1, window_bounds = array<i64: 32, 256>}, {pipeline_mode = #tpu.pipeline_mode<synchronous>, transform_indices = @transform_2, window_bounds = array<i64: 1, 256>}, {pipeline_mode = #tpu.pipeline_mode<synchronous>, transform_indices = @transform_3, window_bounds = array<i64: 256, 128>}, {pipeline_mode = #tpu.pipeline_mode<synchronous>, transform_indices = @transform_4, window_bounds = array<i64: 1, 128>}, {pipeline_mode = #tpu.pipeline_mode<synchronous>, transform_indices = @transform_5, window_bounds = array<i64: 128, 128>}, {pipeline_mode = #tpu.pipeline_mode<synchronous>, transform_indices = @transform_6, window_bounds = array<i64: 1, 128>}, {transform_indices = @transform_7, window_bounds = array<i64: 8, 128>}]} {
    %c8_i32 = arith.constant 8 : i32
    %0 = arith.muli %arg0, %c8_i32 : i32
    %c0_i32 = arith.constant 0 : i32
    %c8_i32_0 = arith.constant 8 : i32
    %1 = arith.addi %c0_i32, %c8_i32_0 : i32
    %c1_i32 = arith.constant 1 : i32
    scf.for %arg11 = %c0_i32 to %1 step %c1_i32  : i32 {
      %23 = arith.addi %0, %arg11 : i32
      %c8_i32_21 = arith.constant 8 : i32
      %24 = arith.muli %23, %c8_i32_21 : i32
      %25 = arith.index_cast %24 : i32 to index
      %26 = memref.load %arg1[%25] : memref<64xi32, #tpu.memory_space<smem>>
      %27 = arith.index_cast %26 : i32 to index
      %c0_22 = arith.constant 0 : index
      %28 = vector.load %arg2[%27, %c0_22] : memref<64x32xf32, #tpu.memory_space<vmem>>, vector<1x32xf32>
      %c1_i32_23 = arith.constant 1 : i32
      %29 = arith.addi %24, %c1_i32_23 : i32
      %30 = arith.index_cast %29 : i32 to index
      %31 = memref.load %arg1[%30] : memref<64xi32, #tpu.memory_space<smem>>
      %32 = arith.index_cast %31 : i32 to index
      %c0_24 = arith.constant 0 : index
      %33 = vector.load %arg2[%32, %c0_24] : memref<64x32xf32, #tpu.memory_space<vmem>>, vector<1x32xf32>
      %34 = arith.addf %28, %33 : vector<1x32xf32>
      %c2_i32 = arith.constant 2 : i32
      %35 = arith.addi %24, %c2_i32 : i32
      %36 = arith.index_cast %35 : i32 to index
      %37 = memref.load %arg1[%36] : memref<64xi32, #tpu.memory_space<smem>>
      %38 = arith.index_cast %37 : i32 to index
      %c0_25 = arith.constant 0 : index
      %39 = vector.load %arg2[%38, %c0_25] : memref<64x32xf32, #tpu.memory_space<vmem>>, vector<1x32xf32>
      %40 = arith.addf %34, %39 : vector<1x32xf32>
      %c3_i32 = arith.constant 3 : i32
      %41 = arith.addi %24, %c3_i32 : i32
      %42 = arith.index_cast %41 : i32 to index
      %43 = memref.load %arg1[%42] : memref<64xi32, #tpu.memory_space<smem>>
      %44 = arith.index_cast %43 : i32 to index
      %c0_26 = arith.constant 0 : index
      %45 = vector.load %arg2[%44, %c0_26] : memref<64x32xf32, #tpu.memory_space<vmem>>, vector<1x32xf32>
      %46 = arith.addf %40, %45 : vector<1x32xf32>
      %c4_i32 = arith.constant 4 : i32
      %47 = arith.addi %24, %c4_i32 : i32
      %48 = arith.index_cast %47 : i32 to index
      %49 = memref.load %arg1[%48] : memref<64xi32, #tpu.memory_space<smem>>
      %50 = arith.index_cast %49 : i32 to index
      %c0_27 = arith.constant 0 : index
      %51 = vector.load %arg2[%50, %c0_27] : memref<64x32xf32, #tpu.memory_space<vmem>>, vector<1x32xf32>
      %52 = arith.addf %46, %51 : vector<1x32xf32>
      %c5_i32 = arith.constant 5 : i32
      %53 = arith.addi %24, %c5_i32 : i32
      %54 = arith.index_cast %53 : i32 to index
      %55 = memref.load %arg1[%54] : memref<64xi32, #tpu.memory_space<smem>>
      %56 = arith.index_cast %55 : i32 to index
      %c0_28 = arith.constant 0 : index
      %57 = vector.load %arg2[%56, %c0_28] : memref<64x32xf32, #tpu.memory_space<vmem>>, vector<1x32xf32>
      %58 = arith.addf %52, %57 : vector<1x32xf32>
      %c6_i32 = arith.constant 6 : i32
      %59 = arith.addi %24, %c6_i32 : i32
      %60 = arith.index_cast %59 : i32 to index
      %61 = memref.load %arg1[%60] : memref<64xi32, #tpu.memory_space<smem>>
      %62 = arith.index_cast %61 : i32 to index
      %c0_29 = arith.constant 0 : index
      %63 = vector.load %arg2[%62, %c0_29] : memref<64x32xf32, #tpu.memory_space<vmem>>, vector<1x32xf32>
      %64 = arith.addf %58, %63 : vector<1x32xf32>
      %c7_i32 = arith.constant 7 : i32
      %65 = arith.addi %24, %c7_i32 : i32
      %66 = arith.index_cast %65 : i32 to index
      %67 = memref.load %arg1[%66] : memref<64xi32, #tpu.memory_space<smem>>
      %68 = arith.index_cast %67 : i32 to index
      %c0_30 = arith.constant 0 : index
      %69 = vector.load %arg2[%68, %c0_30] : memref<64x32xf32, #tpu.memory_space<vmem>>, vector<1x32xf32>
      %70 = arith.addf %64, %69 : vector<1x32xf32>
      %71 = arith.index_cast %arg11 : i32 to index
      %c0_31 = arith.constant 0 : index
      %72 = vector.load %arg10[%71, %c0_31] : memref<8x32xf32, #tpu.memory_space<vmem>>, vector<1x32xf32>
      tpu.vector_store %arg10[%71, %c0_31], %70 {strides = array<i32>} : memref<8x32xf32, #tpu.memory_space<vmem>>, vector<1x32xf32>,
    }
    %c8_i32_1 = arith.constant 8 : i32
    %c0 = arith.constant 0 : index
    %c0_2 = arith.constant 0 : index
    %2 = vector.load %arg10[%c0, %c0_2] : memref<8x32xf32, #tpu.memory_space<vmem>>, vector<8x32xf32>
    %c0_3 = arith.constant 0 : index
    %c0_4 = arith.constant 0 : index
    %3 = vector.load %arg3[%c0_3, %c0_4] : memref<32x256xf32, #tpu.memory_space<vmem>>, vector<32x256xf32>
    %cst = arith.constant dense<0.000000e+00> : vector<8x256xf32>
    %4 = tpu.matmul %2, %3, %cst {dimension_numbers = #tpu.dot_dimension_numbers<[1], [0], [0], [1], [0, 0, 1, 1], [], []>} : vector<8x32xf32>, vector<32x256xf32>, vector<8x256xf32> -> vector<8x256xf32>
    %c0_5 = arith.constant 0 : index
    %c0_6 = arith.constant 0 : index
    %5 = vector.load %arg4[%c0_5, %c0_6] : memref<1x256xf32, #tpu.memory_space<vmem>>, vector<1x256xf32>
    %6 = vector.broadcast %5 : vector<1x256xf32> to vector<8x256xf32>
    %7 = arith.addf %4, %6 : vector<8x256xf32>
    %cst_7 = arith.constant 0.000000e+00 : f32
    %8 = vector.broadcast %cst_7 : f32 to vector<8x256xf32>
    %9 = arith.maximumf %7, %8 : vector<8x256xf32>
    %c0_8 = arith.constant 0 : index
    %c0_9 = arith.constant 0 : index
    %10 = vector.load %arg5[%c0_8, %c0_9] : memref<256x128xf32, #tpu.memory_space<vmem>>, vector<256x128xf32>
    %cst_10 = arith.constant dense<0.000000e+00> : vector<8x128xf32>
    %11 = tpu.matmul %9, %10, %cst_10 {dimension_numbers = #tpu.dot_dimension_numbers<[1], [0], [0], [1], [0, 0, 1, 1], [], []>} : vector<8x256xf32>, vector<256x128xf32>, vector<8x128xf32> -> vector<8x128xf32>
    %c0_11 = arith.constant 0 : index
    %c0_12 = arith.constant 0 : index
    %12 = vector.load %arg6[%c0_11, %c0_12] : memref<1x128xf32, #tpu.memory_space<vmem>>, vector<1x128xf32>
    %13 = vector.broadcast %12 : vector<1x128xf32> to vector<8x128xf32>
    %14 = arith.addf %11, %13 : vector<8x128xf32>
    %cst_13 = arith.constant 0.000000e+00 : f32
    %15 = vector.broadcast %cst_13 : f32 to vector<8x128xf32>
    %16 = arith.maximumf %14, %15 : vector<8x128xf32>
    %c0_14 = arith.constant 0 : index
    %c0_15 = arith.constant 0 : index
    %17 = vector.load %arg7[%c0_14, %c0_15] : memref<128x128xf32, #tpu.memory_space<vmem>>, vector<128x128xf32>
    %cst_16 = arith.constant dense<0.000000e+00> : vector<8x128xf32>
    %18 = tpu.matmul %16, %17, %cst_16 {dimension_numbers = #tpu.dot_dimension_numbers<[1], [0], [0], [1], [0, 0, 1, 1], [], []>} : vector<8x128xf32>, vector<128x128xf32>, vector<8x128xf32> -> vector<8x128xf32>
    %c0_17 = arith.constant 0 : index
    %c0_18 = arith.constant 0 : index
    %19 = vector.load %arg8[%c0_17, %c0_18] : memref<1x128xf32, #tpu.memory_space<vmem>>, vector<1x128xf32>
    %20 = vector.broadcast %19 : vector<1x128xf32> to vector<8x128xf32>
    %21 = arith.addf %18, %20 : vector<8x128xf32>
    %c0_19 = arith.constant 0 : index
    %c0_20 = arith.constant 0 : index
    %22 = vector.load %arg9[%c0_19, %c0_20] : memref<8x128xf32, #tpu.memory_space<vmem>>, vector<8x128xf32>
    tpu.vector_store %arg9[%c0_19, %c0_20], %21 {strides = array<i32>} : memref<8x128xf32, #tpu.memory_space<vmem>>, vector<8x128xf32>,
    return
  }
  func.func @transform_0(%arg0: i32, %arg1: memref<64xi32, #tpu.memory_space<smem>>) -> (i32, i32) {
    %c0_i32 = arith.constant 0 : i32
    %c0_i32_0 = arith.constant 0 : i32
    %c0_i32_1 = arith.constant 0 : i32
    return %c0_i32, %c0_i32_0 : i32, i32
  }
  func.func @transform_1(%arg0: i32, %arg1: memref<64xi32, #tpu.memory_space<smem>>) -> (i32, i32) {
    %c0_i32 = arith.constant 0 : i32
    %c0_i32_0 = arith.constant 0 : i32
    %c0_i32_1 = arith.constant 0 : i32
    return %c0_i32, %c0_i32_0 : i32, i32
  }
  func.func @transform_2(%arg0: i32, %arg1: memref<64xi32, #tpu.memory_space<smem>>) -> (i32, i32) {
    %c0_i32 = arith.constant 0 : i32
    %c0_i32_0 = arith.constant 0 : i32
    %c0_i32_1 = arith.constant 0 : i32
    return %c0_i32, %c0_i32_0 : i32, i32
  }
  func.func @transform_3(%arg0: i32, %arg1: memref<64xi32, #tpu.memory_space<smem>>) -> (i32, i32) {
    %c0_i32 = arith.constant 0 : i32
    %c0_i32_0 = arith.constant 0 : i32
    %c0_i32_1 = arith.constant 0 : i32
    return %c0_i32, %c0_i32_0 : i32, i32
  }
  func.func @transform_4(%arg0: i32, %arg1: memref<64xi32, #tpu.memory_space<smem>>) -> (i32, i32) {
    %c0_i32 = arith.constant 0 : i32
    %c0_i32_0 = arith.constant 0 : i32
    %c0_i32_1 = arith.constant 0 : i32
    return %c0_i32, %c0_i32_0 : i32, i32
  }
  func.func @transform_5(%arg0: i32, %arg1: memref<64xi32, #tpu.memory_space<smem>>) -> (i32, i32) {
    %c0_i32 = arith.constant 0 : i32
    %c0_i32_0 = arith.constant 0 : i32
    %c0_i32_1 = arith.constant 0 : i32
    return %c0_i32, %c0_i32_0 : i32, i32
  }
  func.func @transform_6(%arg0: i32, %arg1: memref<64xi32, #tpu.memory_space<smem>>) -> (i32, i32) {
    %c0_i32 = arith.constant 0 : i32
    %c0_i32_0 = arith.constant 0 : i32
    %c0_i32_1 = arith.constant 0 : i32
    return %c0_i32, %c0_i32_0 : i32, i32
  }
  func.func @transform_7(%arg0: i32, %arg1: memref<64xi32, #tpu.memory_space<smem>>) -> (i32, i32) {
    %c0_i32 = arith.constant 0 : i32
    %c0_i32_0 = arith.constant 0 : i32
    return %arg0, %c0_i32 : i32, i32
  }
}

</mosaic_0001>

<bundles_post_ra>
// kernel: tpu_custom_call.1
= control target key start
LH: loop header
LB: loop body
LE: loop exit
PB: predicated region body
PF: predicated region fallthrough
CT: control target
= control target key end

     0   :  { %s872_s0 = inlined_call_operand.vmem [shape: s32[64], index: 0, kind: input, shape index: {}]   ;;  %s873_s1 = inlined_call_operand.vmem [shape: f32[64,32], index: 1, kind: input, shape index: {}]   ;;  %s874_s2 = inlined_call_operand.vmem [shape: f32[32,256], index: 2, kind: input, shape index: {}]   ;;  %s875_s3 = inlined_call_operand.vmem [shape: f32[1,256], index: 3, kind: input, shape index: {}]   ;;  %s876_s4 = inlined_call_operand.hbm [shape: f32[256,128], index: 4, kind: input, shape index: {}]   ;;  %s877_s5 = inlined_call_operand.vmem [shape: f32[1,128], index: 5, kind: input, shape index: {}]   ;;  %s878_s6 = inlined_call_operand.hbm [shape: f32[128,128], index: 6, kind: input, shape index: {}]   ;;  %s879_s7 = inlined_call_operand.vmem [shape: f32[1,128], index: 7, kind: input, shape index: {}]   ;;  %s880_s8 = inlined_call_operand.hbm [shape: f32[8,128], index: 8, kind: output, shape index: {}]  }
   0x1   :  { %s13_s29 = sshll.u32 %s872_s0, 4  ;;  %s14_s29 = int_to_ptr.vmem [resolvable:$true] %s13_s29 }
   0x2   :  { %s616_s30 = scalar_lea.vmem %s14_s29, 16  ;;  %p621_p1 = scmp.lt.s32.totalorder %s14_s29, %s14_s29 }
   0x3   :  { %p617_p0 = scmp.ne.s32.totalorder %s14_s29, %s616_s30  ;;  %p622_p2 = scmp.lt.s32.totalorder %s616_s30, %s616_s30 }
   0x5   :  { %p623_p3 = por %p622_p2, %p621_p1 }
   0x7   :  { %p624_p4 = pnand %p623_p3, %p617_p0 }
   0x9   :  { %627 = shalt.err (!%p624_p4)  }
   0xa   :  { %s710_s9 = smov [#allocation4]  }
   0xb   :  { %16 = dma.vmem_to_smem %s14_s29, 16, %s710_s9, [#allocation3] }
   0xc   :  { %698 = dma.done.wait [#allocation3], 16 }
   0xd   :  { %699 = vsyncadd [#allocation3], 4294967280 }
   0xe   :  { %18 = sfence }
   0xf   :  { %19 = vsyncpa [#allocation6], 0 }
  0x10   :  { %20 = vsyncpa [#allocation9], 0 }
  0x11   :  { %21 = vsyncpa [#allocation7], 0  ;;  %s711_s10 = smov [#allocation5]   ;;  %s628_s13 = scalar_lea.hbm %s876_s4, 4096 }
  0x12   :  { %s33_s11 = sshll.u32 %s711_s10, 4  ;;  %p629_p5 = scmp.ne.s32.totalorder %s876_s4, %s628_s13  ;;  %s34_s11 = int_to_ptr.vmem [resolvable:$true] %s33_s11 }
  0x13   :  { %p632_p6 = scmp.lt.u32.totalorder %s628_s13, %s876_s4 }
  0x15   :  { %p634_p7 = pnand %p632_p6, %p629_p5 }
  0x17   :  { %637 = shalt.err (!%p634_p7)
}
  0x18   :  { %s638_s18 = scalar_lea.vmem %s34_s11, 4096  ;;  %p643_p9 = scmp.lt.s32.totalorder %s34_s11, %s34_s11 }
  0x19   :  { %p639_p8 = scmp.ne.s32.totalorder %s34_s11, %s638_s18  ;;  %p644_p10 = scmp.lt.s32.totalorder %s638_s18, %s638_s18 }
  0x1b   :  { %p645_p11 = por %p644_p10, %p643_p9 }
  0x1d   :  { %p646_p12 = pnand %p645_p11, %p639_p8 }
  0x1f   :  { %649 = shalt.err (!%p646_p12)
}
  0x20   :  { %s712_s19 = smov 128   ;;  %s713_s20 = smov 8  }
  0x21   :  { %39 = dma.hbm_to_vmem [thread:$0]  %s876_s4, 4096, %s34_s11, [#allocation6], %s712_s19, %s712_s19, %s713_s20  }
  0x22   :  { %s714_s23 = smov [#allocation8]   ;;  %s650_s27 = scalar_lea.hbm %s878_s6, 2048 }
  0x23   :  { %s47_s24 = sshll.u32 %s714_s23, 4  ;;  %p651_p13 = scmp.ne.s32.totalorder %s878_s6, %s650_s27  ;;  %s48_s24 = int_to_ptr.vmem [resolvable:$true] %s47_s24 }
  0x24   :  { %p654_p0 = scmp.lt.u32.totalorder %s650_s27, %s878_s6 }
  0x26   :  { %p656_p1 = pnand %p654_p0, %p651_p13 }
  0x28   :  { %659 = shalt.err (!%p656_p1)
}
  0x29   :  { %s660_s10 = scalar_lea.vmem %s48_s24, 2048  ;;  %p665_p3 = scmp.lt.s32.totalorder %s48_s24, %s48_s24 }
  0x2a   :  { %p661_p2 = scmp.ne.s32.totalorder %s48_s24, %s660_s10  ;;  %p666_p4 = scmp.lt.s32.totalorder %s660_s10, %s660_s10 }
  0x2c   :  { %p667_p5 = por %p666_p4, %p665_p3 }
  0x2e   :  { %p668_p6 = pnand %p667_p5, %p661_p2 }
  0x30   :  { %671 = shalt.err (!%p668_p6)
}
  0x31   :  { %53 = dma.hbm_to_vmem [thread:$0]  %s878_s6, 2048, %s48_s24, [#allocation9], %s712_s19, %s712_s19, %s713_s20  }
  0x32   :  { %700 = dma.done.wait [#allocation6], 4096  }
  0x33   :  { %701 = vsyncadd [#allocation6], 4294963200 }
  0x34   :  { %702 = dma.done.wait [#allocation9], 2048  }
  0x35   :  { %703 = vsyncadd [#allocation9], 4294965248  ;;  %s791_s0 = smov 0  }
  0x36 LB: > { %s444_s12 = sshll.u32 %s708_s0, 3  ;;  %vm110_vm0 = vcmask 253952   ;;  %s708_s0 = sphi %s791_s0, %s68_s0  }
  0x37   : > { %s71_s13 = sld [smem:[#allocation4 + %s444_s12]]  ;;  %s74_s14 = sadd.s32 1, %s444_s12 }
  0x38   : > { %s75_s15 = sld [smem:[#allocation4 + %s74_s14]]  ;;  %s79_s16 = sadd.s32 2, %s444_s12 }
  0x39   : > { %s80_s17 = sld [smem:[#allocation4 + %s79_s16]]  ;;  %s84_s18 = sadd.s32 3, %s444_s12 }
  0x3a   : > { %s85_s6 = sld [smem:[#allocation4 + %s84_s18]]  ;;  %s89_s19 = sadd.s32 4, %s444_s12 }
  0x3b   : > { %s90_s20 = sld [smem:[#allocation4 + %s89_s19]]  ;;  %s94_s21 = sadd.s32 5, %s444_s12 }
  0x3c   : > { %s95_s22 = sld [smem:[#allocation4 + %s94_s21]]  ;;  %s99_s23 = sadd.s32 6, %s444_s12 }
  0x3d   : > { %s72_s26 = scalar_lea.vmem %s873_s1, %s71_s13  ;;  %s100_s27 = sld [smem:[#allocation4 + %s99_s23]] }
  0x3e   : > { %v73_v0 = vld [vmem:[%s72_s26] sm:$0x1]  ;;  %s76_s30 = scalar_lea.vmem %s873_s1, %s75_s15  ;;  %s104_s9 = sadd.s32 7, %s444_s12 }
  0x3f   : > { %v77_v1 = vld [vmem:[%s76_s30] sm:$0x1]  ;;  %s81_s11 = scalar_lea.vmem %s873_s1, %s80_s17  ;;  %s105_s14 = sld [smem:[#allocation4 + %s104_s9]] }
  0x40   : > { %v78_v2 = vadd.f32 %v77_v1, %v73_v0  ;;  %v82_v3 = vld [vmem:[%s81_s11] sm:$0x1]  ;;  %s86_s19 = scalar_lea.vmem %s873_s1, %s85_s6 }
  0x41   : > { %v87_v4 = vld [vmem:[%s86_s19] sm:$0x1]  ;;  %s91_s23 = scalar_lea.vmem %s873_s1, %s90_s20  ;;  %s109_s20 = scalar_lea.vmem [#allocation2], %s708_s0 }
  0x42   : > { %v83_v5 = vadd.f32 %v82_v3, %v78_v2  ;;  %s96_s24 = scalar_lea.vmem %s873_s1, %s95_s22  ;;  %v92_v6 = vld [vmem:[%s91_s23] sm:$0x1]  ;;  %s68_s0 = sadd.s32 1, %s708_s0  }
  0x43   : > { %s101_s26 = scalar_lea.vmem %s873_s1, %s100_s27  ;;  %v97_v8 = vld [vmem:[%s96_s24] sm:$0x1]  ;;  %p65_p7 = scmp.ge.s32.totalorder %s68_s0, 8  }
  0x44   : > { %v88_v7 = vadd.f32 %v87_v4, %v83_v5  ;;  %v102_v10 = vld [vmem:[%s101_s26] sm:$0x1]  ;;  %v114_v15 = vld [vmem:[%s874_s2 + $0x8] sm:$0xff] (%p65_p7)  ;;  %v116_v16 = vld [vmem:[%s874_s2 + $0x18] sm:$0xff] (%p65_p7)  ;;  %v715_v22 = vmov (%p65_p7), 0.0   ;;  %vm133_vm1 = vcmask (%p65_p7), 261120  }
  0x45   : > { %s106_s29 = scalar_lea.vmem %s873_s1, %s105_s14  ;;  %v113_v17 = vld [vmem:[%s874_s2] sm:$0xff] (%p65_p7)  ;;  %v535_v18 = vpack.c.bf16 (%p65_p7), %v116_v16, %v114_v15  ;;  %v115_v19 = vld [vmem:[%s874_s2 + $0x10] sm:$0xff] (%p65_p7)  ;;  %v118_v20 = vld [vmem:[%s874_s2 + $0x28] sm:$0xff] (%p65_p7)  ;;  %201 = vmatprep.mubr.f32.mxu0 (%p65_p7), %v715_v22  ;;  %v716_v16 = vmov (%p65_p7), 0.0|0.0   ;;  %vm717_vm2 = vmmov (%p65_p7), 0   ;;  %s718_s25 = smov (%p65_p7), [#allocation10]  }
  0x46   : > { %v93_v9 = vadd.f32 %v92_v6, %v88_v7  ;;  %v107_v12 = vld [vmem:[%s106_s29] sm:$0x1]  ;;  %v120_v21 = vld [vmem:[%s874_s2 + $0x38] sm:$0xff] (%p65_p7)  ;;  %v537_v23 = vpack.c.bf16 (%p65_p7), %v115_v19, %v113_v17  ;;  %v119_v26 = vld [vmem:[%s874_s2 + $0x30] sm:$0xff] (%p65_p7)  ;;  %s420_s26 = sshll.u32 (%p65_p7), %s718_s25, 4  ;;  %s421_s26 = int_to_ptr.vmem [resolvable:$true] %s420_s26 }
  0x47   :  { %v539_v24 = vpack.c.bf16 (%p65_p7), %v120_v21, %v118_v20  ;;  %v117_v25 = vld [vmem:[%s874_s2 + $0x20] sm:$0xff] (%p65_p7)  ;;  %536 = vmatprep.subr.bf16.mxu0 (%p65_p7), %v535_v18  ;;  %v226_v27 = vld [vmem:[#allocation5 + $0x80] sm:$0xff] (%p65_p7)  ;;  %v227_v28 = vld [vmem:[#allocation5 + $0x88] sm:$0xff] (%p65_p7)  ;;  %s672_s6 = scalar_lea.vmem (%p65_p7), %s421_s26, 128  ;;  %p677_p9 = scmp.lt.s32.totalorder (%p65_p7), %s421_s26, %s421_s26 }
  0x48   : > { %v98_v11 = vadd.f32 %v97_v8, %v93_v9  ;;  %67 = sbr.rel (!%p65_p7) target bundleno = 54 (0x36), region = 72  ;;  %v210_v29 = vld [vmem:[#allocation5] sm:$0xff] (%p65_p7)  ;;  %538 = vmatpush1.bf16.msra.mxu0 (%p65_p7), %v537_v23  ;;  %v541_v30 = vpack.c.bf16 (%p65_p7), %v119_v26, %v117_v25  ;;  %v543_v31 = vpack.c.bf16 (%p65_p7), %v227_v28, %v226_v27  ;;  %v211_v32 = vld [vmem:[#allocation5 + $0x8] sm:$0xff] (%p65_p7)  ;;  %v228_v33 = vld [vmem:[#allocation5 + $0x90] sm:$0xff] (%p65_p7)  ;;  %p673_p8 = scmp.ne.s32.totalorder (%p65_p7), %s421_s26, %s672_s6 }
  0x49   :  { %v229_v34 = vld [vmem:[#allocation5 + $0x98] sm:$0xff] (%p65_p7)  ;;  %540 = vmatprep.subr.bf16.mxu0 (%p65_p7), %v539_v24  ;;  %v545_v35 = vpack.c.bf16 (%p65_p7), %v211_v32, %v210_v29  ;;  %v212_v37 = vld [vmem:[#allocation5 + $0x10] sm:$0xff] (%p65_p7)  ;;  %v230_v39 = vld [vmem:[#allocation5 + $0xa0] sm:$0xff] (%p65_p7)  ;;  %p678_p10 = scmp.lt.s32.totalorder (%p65_p7), %s672_s6, %s672_s6 }
  0x4a   : > { %v103_v13 = vadd.f32 %v102_v10, %v98_v11  ;;  %v547_v36 = vpack.c.bf16 (%p65_p7), %v229_v34, %v228_v33  ;;  %v213_v38 = vld [vmem:[#allocation5 + $0x18] sm:$0xff] (%p65_p7)  ;;  %544 = vmatprep.subr.bf16.mxu1 (%p65_p7), %v543_v31  ;;  %v231_v40 = vld [vmem:[#allocation5 + $0xa8] sm:$0xff] (%p65_p7)  ;;  %v214_v44 = vld [vmem:[#allocation5 + $0x20] sm:$0xff] (%p65_p7)  ;;  %v123_v33 = vlaneseq (%p65_p7) }
  0x4b   :  { %546 = vmatpush3.bf16.msra.mxu1 (%p65_p7), %v545_v35  ;;  %v549_v41 = vpack.c.bf16 (%p65_p7), %v213_v38, %v212_v37  ;;  %v551_v43 = vpack.c.bf16 (%p65_p7), %v231_v40, %v230_v39  ;;  %v215_v45 = vld [vmem:[#allocation5 + $0x28] sm:$0xff] (%p65_p7)  ;;  %v232_v46 = vld [vmem:[#allocation5 + $0xb0] sm:$0xff] (%p65_p7)  ;;  %v233_v47 = vld [vmem:[#allocation5 + $0xb8] sm:$0xff] (%p65_p7)  ;;  %p679_p11 = por (%p65_p7), %p678_p10, %p677_p9 }
  0x4c   : > { %v108_v14 = vadd.f32 %v107_v12, %v103_v13  ;;  %542 = vmatpush1.bf16.msra.mxu0 (%p65_p7), %v541_v30  ;;  %548 = vmatprep.subr.bf16.mxu1 (%p65_p7), %v547_v36  ;;  %v553_v48 = vpack.c.bf16 (%p65_p7), %v215_v45, %v214_v44  ;;  %v555_v49 = vpack.c.bf16 (%p65_p7), %v233_v47, %v232_v46  ;;  %v216_v50 = vld [vmem:[#allocation5 + $0x30] sm:$0xff] (%p65_p7)  ;;  %v217_v51 = vld [vmem:[#allocation5 + $0x38] sm:$0xff] (%p65_p7)  ;;  %v234_v52 = vld [vmem:[#allocation5 + $0xc0] sm:$0xff] (%p65_p7)  ;;  %v124_v34 = vshrl.u32 (%p65_p7), %v123_v33, 7 }
  0x4d   :  { %v235_v53 = vld [vmem:[#allocation5 + $0xc8] sm:$0xff] (%p65_p7)  ;;  %v557_v54 = vpack.c.bf16 (%p65_p7), %v217_v51, %v216_v50  ;;  %v218_v56 = vld [vmem:[#allocation5 + $0x40] sm:$0xff] (%p65_p7)  ;;  %v236_v58 = vld [vmem:[#allocation5 + $0xd0] sm:$0xff] (%p65_p7)  ;;  %575 = vmatprep.subr.bf16.mxu0 (%p65_p7), %v716_v16  ;;  %p680_p12 = pnand (%p65_p7), %p679_p11, %p673_p8 }
  0x4e   : > { %111 = vst.msk [vmem:[%s109_s20] sm:$0x1] %vm110_vm0, %v108_v14  ;;  %v559_v55 = vpack.c.bf16 (%p65_p7), %v235_v53, %v234_v52  ;;  %v219_v57 = vld [vmem:[#allocation5 + $0x48] sm:$0xff] (%p65_p7)  ;;  %v237_v59 = vld [vmem:[#allocation5 + $0xd8] sm:$0xff] (%p65_p7)  ;;  %v220_v62 = vld [vmem:[#allocation5 + $0x50] sm:$0xff] (%p65_p7)  ;;  %v125_v35 = vsub.s32 (%p65_p7), 0, %v124_v34 }
  0x4f   :  { %550 = vmatpush3.bf16.msra.mxu1 %v549_v41  ;;  %v561_v60 = vpack.c.bf16 %v219_v57, %v218_v56  ;;  %v563_v61 = vpack.c.bf16 %v237_v59, %v236_v58  ;;  %v221_v63 = vld [vmem:[#allocation5 + $0x58] sm:$0xff]  ;;  %v238_v0 = vld [vmem:[#allocation5 + $0xe0] sm:$0xff]  ;;  %v239_v1 = vld [vmem:[#allocation5 + $0xe8] sm:$0xff]  ;;  %v129_v37 = vsub.s32 1, %v124_v34 }
  0x50   :  { %552 = vmatprep.subr.bf16.mxu1 %v551_v43  ;;  %v565_v2 = vpack.c.bf16 %v221_v63, %v220_v62  ;;  %v567_v3 = vpack.c.bf16 %v239_v1, %v238_v0  ;;  %v222_v4 = vld [vmem:[#allocation5 + $0x60] sm:$0xff]  ;;  %v223_v5 = vld [vmem:[#allocation5 + $0x68] sm:$0xff]  ;;  %v240_v7 = vld [vmem:[#allocation5 + $0xf0] sm:$0xff] }
  0x51   :  { %v569_v6 = vpack.c.bf16 %v223_v5, %v222_v4  ;;  %v241_v8 = vld [vmem:[#allocation5 + $0xf8] sm:$0xff]  ;;  %v224_v10 = vld [vmem:[#allocation5 + $0x70] sm:$0xff]  ;;  %v320_v13 = vld [vmem:[#allocation8] sm:$0xff] }
  0x52   :  { %v571_v9 = vpack.c.bf16 %v241_v8, %v240_v7  ;;  %v225_v11 = vld [vmem:[#allocation5 + $0x78] sm:$0xff]  ;;  %v321_v14 = vld [vmem:[#allocation8 + $0x8] sm:$0xff]  ;;  %v322_v15 = vld [vmem:[#allocation8 + $0x10] sm:$0xff] }
  0x53   :  { %554 = vmatpush3.bf16.msra.mxu1 %v553_v48  ;;  %v573_v12 = vpack.c.bf16 %v225_v11, %v224_v10  ;;  %v576_v17 = vpack.c.bf16 %v321_v14, %v320_v13  ;;  %v323_v18 = vld [vmem:[#allocation8 + $0x18] sm:$0xff]  ;;  %v324_v20 = vld [vmem:[#allocation8 + $0x20] sm:$0xff]  ;;  %v325_v21 = vld [vmem:[#allocation8 + $0x28] sm:$0xff] }
  0x54   :  { %556 = vmatprep.subr.bf16.mxu1 %v555_v49  ;;  %v579_v19 = vpack.c.bf16 %v323_v18, %v322_v15  ;;  %v582_v23 = vpack.c.bf16 %v325_v21, %v324_v20  ;;  %v326_v24 = vld [vmem:[#allocation8 + $0x30] sm:$0xff]  ;;  %v327_v25 = vld [vmem:[#allocation8 + $0x38] sm:$0xff]  ;;  %v328_v27 = vld [vmem:[#allocation8 + $0x40] sm:$0xff] }
  0x55   :  { %v112_v42 = vld [vmem:[#allocation2] sm:$0xff]  ;;  %v585_v26 = vpack.c.bf16 %v327_v25, %v326_v24  ;;  %v329_v28 = vld [vmem:[#allocation8 + $0x48] sm:$0xff]  ;;  %v330_v30 = vld [vmem:[#allocation8 + $0x50] sm:$0xff] }
  0x56   :  { %445 = vmatmul.mubr.msk.f32.vlgmr.msra.gmra.mrb[0].mxu0 %vm133_vm1, %v112_v42  ;;  %v588_v29 = vpack.c.bf16 %v329_v28, %v328_v27  ;;  %v331_v31 = vld [vmem:[#allocation8 + $0x58] sm:$0xff]  ;;  %v332_v46 = vld [vmem:[#allocation8 + $0x60] sm:$0xff]  ;;  %v333_v47 = vld [vmem:[#allocation8 + $0x68] sm:$0xff] }
  0x57   :  { %558 = vmatpush3.bf16.msra.mxu1 %v557_v54  ;;  %577 = vmatpush3.bf16.msra.mxu0 %v576_v17  ;;  %v591_v32 = vpack.c.bf16 %v331_v31, %v330_v30  ;;  %v121_v36 = vld [vmem:[%s875_s3] sm:$0x3]  ;;  %v594_v48 = vpack.c.bf16 %v333_v47, %v332_v46  ;;  %v334_v49 = vld [vmem:[#allocation8 + $0x70] sm:$0xff] }
  0x58   :  { %560 = vmatprep.subr.bf16.mxu1 %v559_v55  ;;  %578 = vmatprep.subr.bf16.mxu0 %v716_v16  ;;  %v126_v38 = vrot.slane %v121_v36, %v125_v35  ;;  %v130_v39 = vrot.slane %v121_v36, %v129_v37  ;;  %v335_v50 = vld [vmem:[#allocation8 + $0x78] sm:$0xff] }
  0x59   :  { %v597_v51 = vpack.c.bf16 %v335_v50, %v334_v49  ;;  %532 = vmatprep.mubr.msk.f32.mxu0 %vm717_vm2, %v715_v22  ;;  %v446_v53 = vld [vmem:[%s877_s5] ss:$0 sm:$0xff] }
  0x5a   :  { %v447_v58 = vld [vmem:[%s879_s7] ss:$0 sm:$0xff] }
  0x5b   :  { %562 = vmatpush3.bf16.msra.mxu1 %v561_v60  ;;  %580 = vmatpush3.bf16.msra.mxu0 %v579_v19 }
  0x5c   :  { %564 = vmatprep.subr.bf16.mxu1 %v563_v61  ;;  %581 = vmatprep.subr.bf16.mxu0 %v716_v16 }
  0x5f   :  { %566 = vmatpush3.bf16.msra.mxu1 %v565_v2  ;;  %583 = vmatpush3.bf16.msra.mxu0 %v582_v23 }
  0x60   :  { %568 = vmatprep.subr.bf16.mxu1 %v567_v3  ;;  %584 = vmatprep.subr.bf16.mxu0 %v716_v16 }
  0x63   :  { %570 = vmatpush3.bf16.msra.mxu1 %v569_v6  ;;  %586 = vmatpush3.bf16.msra.mxu0 %v585_v26 }
  0x64   :  { %572 = vmatprep.subr.bf16.mxu1 %v571_v9  ;;  %587 = vmatprep.subr.bf16.mxu0 %v716_v16 }
  0x67   :  { %574 = vmatpush3.bf16.msra.mxu1 %v573_v12  ;;  %589 = vmatpush3.bf16.msra.mxu0 %v588_v29 }
  0x68   :  { %590 = vmatprep.subr.bf16.mxu0 %v716_v16 }
  0x6b   :  { %592 = vmatpush3.bf16.msra.mxu0 %v591_v32 }
  0x6c   :  { %593 = vmatprep.subr.bf16.mxu0 %v716_v16 }
  0x6f   :  { %595 = vmatpush3.bf16.msra.mxu0 %v594_v48 }
  0x70   :  { %596 = vmatprep.subr.bf16.mxu0 %v716_v16 }
  0x73   :  { %598 = vmatpush3.bf16.msra.mxu0 %v597_v51 }
 0x129   :  { %v203_v40 = vpop.f32.mrb[0].mxu0 }
 0x12a   :  { %v204_v41 = vadd.f32 %v203_v40, %v126_v38  ;;  %v205_v42 = vpop.f32.mrb[1].mxu0 }
 0x12b   :  { %v206_v43 = vadd.f32 %v205_v42, %v130_v39 }
 0x12c   :  { %v208_v45 = vmax.f32 %v204_v41, 0.0 }
 0x12d   :  { %v209_v44 = vmax.f32 %v206_v43, 0.0 }
 0x12f   :  { %313 = vmatprep.mubr.f32.mxu1 %v209_v44 }
 0x130   :  { %314 = vmatmul.mubr.f32.vlgmr.msra.gmra.mrb[0].mxu1 %v208_v45 }
 0x203   :  { %v480_v52 = vpop.f32.mrb[0].mxu1 }
 0x204   :  { %v481_v54 = vpop.f32.mrb[1].mxu1 }
 0x205   :  { %v482_v55 = vadd.f32 %v481_v54, %v480_v52 }
 0x207   :  { %v316_v56 = vadd.f32 %v482_v55, %v446_v53 }
 0x209   :  { %v319_v57 = vmax.f32 %v316_v56, 0.0 }
 0x20b   :  { %533 = vmatmul.mubr.f32.vlgmr.msra.gmra.mrb[2].mxu0 %v319_v57 }
 0x2de   :  { %v409_v59 = vpop.f32.mrb[2].mxu0 }
 0x2df   :  { %v410_v60 = vadd.f32 %v447_v58, %v409_v59  ;;  %v534_v61 = vpop.f32.mrb[3].mxu0 }
 0x2e1   :  { %413 = vst [vmem:[#allocation10] sm:$0xff] %v410_v60 }
 0x2e2   :  { %683 = shalt.err (!%p680_p12)
}
 0x2e3   :  { %s684_s29 = scalar_lea.hbm %s880_s8, 128 }
 0x2e4   :  { %p685_p13 = scmp.ne.s32.totalorder %s880_s8, %s684_s29  ;;  %p688_p0 = scmp.lt.u32.totalorder %s684_s29, %s880_s8 }
 0x2e6   :  { %p690_p1 = pnand %p688_p0, %p685_p13 }
 0x2e8   :  { %693 = shalt.err (!%p690_p1)
}
 0x2e9   :  { %423 = dma.vmem_to_hbm [thread:$0]  %s421_s26, 128, %s880_s8, [#allocation7]  }
 0x2ea   :  { %704 = dma.done.wait [#allocation7], 128  }
 0x2eb   :  { %705 = vsyncadd [#allocation7], 4294967168 }
 0x2ec   :  { %427 = vsyncpa [#allocation6], 1 }
 0x2ed   :  { %428 = vsyncpa [#allocation9], 1 }
 0x2ee   :  { %429 = vsyncpa [#allocation7], 1 }

</bundles_post_ra>
